<compile_context>
chip_gen: v7x
topology: tpu7x:2x2x1
jax: 0.10.0
libtpu: 0.0.40
codegen_flags: <defaults>
</compile_context>

<pallas_src>
import functools

import jax
import jax.numpy as jnp
from jax import lax
from jax.experimental import pallas as pl
from jax.experimental.pallas import tpu as pltpu

H = 32            # Denoiser(x_h=32, x_w=32)
W = 32
HW = H * W
C_IN = 3
C_HID = 16
C_PAD = 16        # all activations padded to 16 channels
K9 = 9 * C_PAD    # packed weight row length (144)
N_CLASSES = 10
NCLS_PAD = 128    # lane-dense logits slab width
B_TILE = 16       # images per grid step

# Matmul-operand dtype (conv taps).  bf16 operands + f32 accumulation cut the
# MXU pass count 3-4x on every TPU generation; set to jnp.float32 for an
# exactness check.
MM_DTYPE = jnp.bfloat16


# ----------------------------------------------------------------------------
# One-time probe: which direction does pltpu.roll rotate on this backend?
# (jnp.roll convention: out[i] = in[i - shift].)
# ----------------------------------------------------------------------------
@functools.lru_cache(maxsize=None)
def _roll_matches_jnp_convention() -> bool:
    def probe_kernel(x_ref, o_ref):
        o_ref[...] = pltpu.roll(x_ref[...], shift=1, axis=1)

    x = jnp.tile(jnp.arange(128, dtype=jnp.float32)[None, :], (8, 1))
    out = pl.pallas_call(
        probe_kernel,
        out_shape=jax.ShapeDtypeStruct((8, 128), jnp.float32),
    )(x)
    # jnp.roll(x, 1, axis=1)[0, 1] == x[0, 0] == 0.0
    return abs(float(jax.device_get(out[0, 1]))) < 0.5


# ----------------------------------------------------------------------------
# Fused forward kernel
# ----------------------------------------------------------------------------
def full_denoiser_kernel(x_ref, w_ref, b_ref, fcw_ref, fcb_ref, out_ref,
                         *, jnp_roll: bool):
    m = x_ref.shape[1]              # B_TILE * H * W
    b_tile = out_ref.shape[0]       # B_TILE

    def shift_for(s):
        # want window[p] = act[p + s]
        return (-s) % m if jnp_roll else s % m

    # ---- spatial boundary masks, hoisted once and reused by all 4 convs ----
    pos = lax.broadcasted_iota(jnp.int32, (1, m), 1)
    rowi = (pos // W) % H
    colj = pos % W
    top, bot = rowi >= 1, rowi < H - 1
    left, right = colj >= 1, colj < W - 1
    tap_masks = {
        (-1, -1): top & left, (-1, 0): top, (-1, 1): top & right,
        (0, -1): left,                      (0, 1): right,
        (1, -1): bot & left,  (1, 0): bot,  (1, 1): bot & right,
    }

    def conv(k, act):
        """3x3 'same' conv on (C_PAD, m) activations: 9 accumulated MXU taps."""
        wk = w_ref[k]                                         # (C_PAD, K9) f32
        acc = None
        for dy in (-1, 0, 1):
            for dx in (-1, 0, 1):
                t = (dy + 1) * 3 + (dx + 1)
                s = dy * W + dx
                # Shifted window via XLU roll; wrapped positions (cross-row,
                # cross-image, array wrap-around) are exactly the masked ones.
                win = act if s == 0 else pltpu.roll(act, shift=shift_for(s),
                                                    axis=1)
                mask = tap_masks.get((dy, dx))
                if mask is not None:                          # f32 select (VPU)
                    win = jnp.where(mask, win, 0.0)
                w_tap = wk[:, t * C_PAD:(t + 1) * C_PAD].astype(MM_DTYPE)
                part = jnp.dot(w_tap, win.astype(MM_DTYPE),
                               preferred_element_type=jnp.float32)
                acc = part if acc is None else acc + part     # f32 accumulate
        return acc + b_ref[k * C_PAD:(k + 1) * C_PAD, :]      # bias (C_PAD, 1)

    # --- denoiser: conv -> relu -> conv -> relu -> conv  => noise ------------
    h1 = jnp.maximum(conv(0, x_ref[...]), 0.0)
    h2 = jnp.maximum(conv(1, h1), 0.0)
    noise = conv(2, h2)                 # channels >= C_IN stay exactly zero

    # --- FullDenoiser.forward: x_smooth = x_adv + noise ----------------------
    # Re-read x from its resident VMEM block instead of holding it live.
    x_smooth = x_ref[...] + noise

    # --- target model: conv -> relu -> global avg pool -> linear -------------
    t1 = jnp.maximum(conv(3, x_smooth), 0.0)                  # (C_PAD, m)

    # Pooling matrix built in-kernel (no HBM input): pool01[b, p] = [p in img b]
    img_id = pos // HW                                        # (1, m)
    bidx = lax.broadcasted_iota(jnp.int32, (b_tile, m), 0)    # (B_TILE, m)
    pool01 = jnp.where(bidx == img_id, 1.0, 0.0)              # f32
    pooled = lax.dot_general(pool01, t1,
                             dimension_numbers=(((1,), (1,)), ((), ())),
                             preferred_element_type=jnp.float32) * (1.0 / HW)
    logits = jnp.dot(pooled, fcw_ref[...],
                     preferred_element_type=jnp.float32) + fcb_ref[...]
    out_ref[...] = logits                                     # (B_TILE, 128)


# ----------------------------------------------------------------------------
# Wrapper: weight packing + pallas_call
# ----------------------------------------------------------------------------
def _pack_conv(w9, bias, cin, cout):
    """(9, cin, cout) + (1, cout) -> (16, 144) weight, (16,) bias (padded)."""
    w9p = jnp.zeros((9, C_PAD, C_PAD), jnp.float32).at[:, :cin, :cout].set(w9)
    w2 = jnp.transpose(w9p, (2, 0, 1)).reshape(C_PAD, K9)     # [co, t*16 + ci]
    bp = jnp.zeros((C_PAD,), jnp.float32).at[:cout].set(bias[0])
    return w2, bp


def pack_params(params):
    (dw1, db1, dw2, db2, dw3, db3, tw1, tb1, fcw, fcb) = params
    convs = [(dw1, db1, C_IN, C_HID), (dw2, db2, C_HID, C_HID),
             (dw3, db3, C_HID, C_IN), (tw1, tb1, C_IN, C_HID)]
    packed = [_pack_conv(*c) for c in convs]
    w_slab = jnp.stack([p[0] for p in packed])                # (4, 16, 144) f32
    b_slab = jnp.concatenate([p[1] for p in packed]).reshape(4 * C_PAD, 1)
    fcw_pad = jnp.zeros((C_HID, NCLS_PAD), jnp.float32).at[:, :N_CLASSES].set(fcw)
    fcb_pad = jnp.zeros((1, NCLS_PAD), jnp.float32).at[:, :N_CLASSES].set(fcb)
    return w_slab, b_slab, fcw_pad, fcb_pad


def full_denoiser_forward(x_adv_nchw, params):
    """x_adv_nchw: (N, 3, 32, 32) float32 (PyTorch NCHW).  Returns (N, 10)."""
    w_slab, b_slab, fcw_pad, fcb_pad = pack_params(params)
    jnp_roll = _roll_matches_jnp_convention()

    x = x_adv_nchw.astype(jnp.float32)
    n = x.shape[0]
    n_pad = ((n + B_TILE - 1) // B_TILE) * B_TILE
    # pad batch to a multiple of B_TILE and channels to C_PAD, then transpose
    # to channels-major with batch*spatial flattened on the lane axis.
    xp = jnp.pad(x, ((0, n_pad - n), (0, C_PAD - C_IN), (0, 0), (0, 0)))
    x_t = jnp.transpose(xp, (1, 0, 2, 3)).reshape(C_PAD, n_pad * HW)

    m = B_TILE * HW
    kernel = functools.partial(full_denoiser_kernel, jnp_roll=jnp_roll)

    grid_spec = pltpu.PrefetchScalarGridSpec(
        num_scalar_prefetch=0,
        grid=(n_pad // B_TILE,),
        in_specs=[
            pl.BlockSpec((C_PAD, m), lambda i: (0, i)),          # activations
            pl.BlockSpec((4, C_PAD, K9), lambda i: (0, 0, 0)),   # conv weights
            pl.BlockSpec((4 * C_PAD, 1), lambda i: (0, 0)),      # conv biases
            pl.BlockSpec((C_HID, NCLS_PAD), lambda i: (0, 0)),   # fc weight
            pl.BlockSpec((1, NCLS_PAD), lambda i: (0, 0)),       # fc bias
        ],
        out_specs=pl.BlockSpec((B_TILE, NCLS_PAD), lambda i: (i, 0)),
    )
    out = pl.pallas_call(
        kernel,
        out_shape=jax.ShapeDtypeStruct((n_pad, NCLS_PAD), jnp.float32),
        grid_spec=grid_spec,
        compiler_params=pltpu.CompilerParams(
            dimension_semantics=("parallel",),
            vmem_limit_bytes=40 * 1024 * 1024),
    )(x_t, w_slab, b_slab, fcw_pad, fcb_pad)
    return out[:n, :N_CLASSES]


# ----------------------------------------------------------------------------
# Deterministic parameter init (synthetic, no checkpoint)
# ----------------------------------------------------------------------------
def init_params(key):
    ks = jax.random.split(key, 6)
    s = 0.1
    dw1 = jax.random.normal(ks[0], (9, C_IN, C_HID), jnp.float32) * s
    db1 = jnp.full((1, C_HID), 0.01, jnp.float32)
    dw2 = jax.random.normal(ks[1], (9, C_HID, C_HID), jnp.float32) * s
    db2 = jnp.full((1, C_HID), 0.01, jnp.float32)
    dw3 = jax.random.normal(ks[2], (9, C_HID, C_IN), jnp.float32) * s
    db3 = jnp.zeros((1, C_IN), jnp.float32)
    tw1 = jax.random.normal(ks[3], (9, C_IN, C_HID), jnp.float32) * s
    tb1 = jnp.full((1, C_HID), 0.01, jnp.float32)
    fcw = jax.random.normal(ks[4], (C_HID, N_CLASSES), jnp.float32) * s
    fcb = jnp.linspace(-0.05, 0.05, N_CLASSES, dtype=jnp.float32)[None, :]
    return (dw1, db1, dw2, db2, dw3, db3, tw1, tb1, fcw, fcb)


# ----------------------------------------------------------------------------
# Pure-JAX reference (independent NHWC pad+slice formulation, full f32)
# ----------------------------------------------------------------------------
def _conv3x3_ref(x, w, b):
    hh, ww, _ = x.shape
    xp = jnp.pad(x, ((1, 1), (1, 1), (0, 0)))
    acc = jnp.zeros((hh, ww, w.shape[-1]), jnp.float32)
    for dy in range(3):
        for dx in range(3):
            acc = acc + jnp.einsum('hwc,co->hwo',
                                   xp[dy:dy + hh, dx:dx + ww, :],
                                   w[dy * 3 + dx],
                                   precision=jax.lax.Precision.HIGHEST)
    return acc + b[0]


def forward_ref(x_adv_nchw, params):
    (dw1, db1, dw2, db2, dw3, db3, tw1, tb1, fcw, fcb) = params
    x = jnp.transpose(x_adv_nchw, (0, 2, 3, 1)).astype(jnp.float32)

    def one(xi):
        h1 = jnp.maximum(_conv3x3_ref(xi, dw1, db1), 0.0)
        h2 = jnp.maximum(_conv3x3_ref(h1, dw2, db2), 0.0)
        noise = _conv3x3_ref(h2, dw3, db3)
        xs = xi + noise
        t1 = jnp.maximum(_conv3x3_ref(xs, tw1, tb1), 0.0)
        pooled = jnp.mean(t1.reshape(HW, C_HID), axis=0)
        return jnp.dot(pooled, fcw,
                       precision=jax.lax.Precision.HIGHEST) + fcb[0]

    return jax.vmap(one)(x)


if __name__ == "__main__":
    key = jax.random.PRNGKey(0)
    pkey, xkey = jax.random.split(key)
    params = init_params(pkey)
    # Small CIFAR-like adversarial batch, NCHW as the PyTorch module expects.
    # 24 is not a multiple of B_TILE (exercises batch padding) and pads to 32,
    # giving a 2-step "parallel" grid that feeds both v7x TensorCores.
    x_adv = jax.random.normal(xkey, (24, C_IN, H, W), jnp.float32)

    logits = full_denoiser_forward(x_adv, params)
    logits = jax.block_until_ready(logits)

    ref = forward_ref(x_adv, params)
    assert logits.shape == (24, N_CLASSES)
    assert bool(jnp.all(jnp.isfinite(logits)))
    # bf16 matmul operands (f32 accumulation) -> slightly relaxed tolerance.
    assert bool(jnp.allclose(logits, ref, rtol=2e-2, atol=2e-2)), (logits, ref)
    print("KERNEL_OK")
</pallas_src>

<mosaic_0001>
module attributes {stable_mosaic.version = 11 : i64} {
  func.func @probe_kernel(%arg0: memref<8x128xf32, #tpu.memory_space<vmem>>, %arg1: memref<8x128xf32, #tpu.memory_space<vmem>>) attributes {dimension_semantics = [], scalar_prefetch = 0 : i64, scratch_operands = 0 : i64, tpu.core_type = #tpu.core_type<tc>} {
    %c0 = arith.constant 0 : index
    %c0_0 = arith.constant 0 : index
    %0 = vector.load %arg0[%c0, %c0_0] : memref<8x128xf32, #tpu.memory_space<vmem>>, vector<8x128xf32>
    %c1_i32 = arith.constant 1 : i32
    %1 = tpu.dynamic_rotate %0 by %c1_i32 dim 1 : vector<8x128xf32>, i32 -> vector<8x128xf32>
    %c0_1 = arith.constant 0 : index
    %c0_2 = arith.constant 0 : index
    %2 = vector.load %arg1[%c0_1, %c0_2] : memref<8x128xf32, #tpu.memory_space<vmem>>, vector<8x128xf32>
    tpu.vector_store %arg1[%c0_1, %c0_2], %1 {strides = array<i32>} : memref<8x128xf32, #tpu.memory_space<vmem>>, vector<8x128xf32>,
    return
  }
}

</mosaic_0001>

<bundles_post_ra>
// kernel: tpu_custom_call.1
= control target key start
LH: loop header
LB: loop body
LE: loop exit
PB: predicated region body
PF: predicated region fallthrough
CT: control target
= control target key end

     0   :  { %6 = vsyncpa [#allocation3], 0  ;;  %s128_s0 = inlined_call_operand.hbm [shape: f32[8,128], index: 0, kind: input, shape index: {}]   ;;  %s129_s1 = inlined_call_operand.hbm [shape: f32[8,128], index: 1, kind: output, shape index: {}]  }
   0x1   :  { %7 = vsyncpa [#allocation4], 0  ;;  %s91_s6 = smov [#allocation2]   ;;  %s43_s10 = scalar_lea.hbm %s128_s0, 128 }
   0x2   :  { %s14_s7 = sshll.u32 %s91_s6, 4  ;;  %p44_p0 = scmp.ne.s32.totalorder %s128_s0, %s43_s10  ;;  %s15_s7 = int_to_ptr.vmem [resolvable:$true] %s14_s7 }
   0x3   :  { %p47_p1 = scmp.lt.u32.totalorder %s43_s10, %s128_s0 }
   0x5   :  { %p49_p2 = pnand %p47_p1, %p44_p0 }
   0x7   :  { %52 = shalt.err (!%p49_p2)
}
   0x8   :  { %s53_s15 = scalar_lea.vmem %s15_s7, 128  ;;  %p58_p4 = scmp.lt.s32.totalorder %s15_s7, %s15_s7 }
   0x9   :  { %p54_p3 = scmp.ne.s32.totalorder %s15_s7, %s53_s15  ;;  %p59_p5 = scmp.lt.s32.totalorder %s53_s15, %s53_s15 }
   0xb   :  { %p60_p6 = por %p59_p5, %p58_p4 }
   0xd   :  { %p61_p7 = pnand %p60_p6, %p54_p3 }
   0xf   :  { %64 = shalt.err (!%p61_p7)
}
  0x10   :  { %17 = dma.hbm_to_vmem [thread:$0]  %s128_s0, 128, %s15_s7, [#allocation3]  }
  0x11   :  { %87 = dma.done.wait [#allocation3], 128  }
  0x12   :  { %88 = vsyncadd [#allocation3], 4294967168  ;;  %v21_v0 = vld [vmem:[#allocation2] sm:$0xff]  ;;  %s92_s18 = smov 1   ;;  %s93_s19 = smov [#allocation5]  }
  0x13   :  { %22 = vrot.lane.b32.xlu0 %v21_v0, %s92_s18  ;;  %s31_s20 = sshll.u32 %s93_s19, 4  ;;  %s32_s20 = int_to_ptr.vmem [resolvable:$true] %s31_s20 }
  0x14   :  { %s65_s21 = scalar_lea.vmem %s32_s20, 128  ;;  %p70_p9 = scmp.lt.s32.totalorder %s32_s20, %s32_s20 }
  0x15   :  { %p66_p8 = scmp.ne.s32.totalorder %s32_s20, %s65_s21  ;;  %p71_p10 = scmp.lt.s32.totalorder %s65_s21, %s65_s21 }
  0x17   :  { %p72_p11 = por %p71_p10, %p70_p9 }
  0x19   :  { %p73_p12 = pnand %p72_p11, %p66_p8 }
  0x85   :  { %v23_v1 = vpop.permute.xlu0 %22 }
  0x86   :  { %24 = vst [vmem:[#allocation5] sm:$0xff] %v23_v1 }
  0x87   :  { %76 = shalt.err (!%p73_p12)
}
  0x88   :  { %s77_s0 = scalar_lea.hbm %s129_s1, 128 }
  0x89   :  { %p78_p13 = scmp.ne.s32.totalorder %s129_s1, %s77_s0  ;;  %p81_p0 = scmp.lt.u32.totalorder %s77_s0, %s129_s1 }
  0x8b   :  { %p83_p1 = pnand %p81_p0, %p78_p13 }
  0x8d   :  { %86 = shalt.err (!%p83_p1)
}
  0x8e   :  { %34 = dma.vmem_to_hbm [thread:$0]  %s32_s20, 128, %s129_s1, [#allocation4]  }
  0x8f   :  { %89 = dma.done.wait [#allocation4], 128  }
  0x90   :  { %90 = vsyncadd [#allocation4], 4294967168 }
  0x91   :  { %38 = vsyncpa [#allocation3], 1 }
  0x92   :  { %39 = vsyncpa [#allocation4], 1 }

</bundles_post_ra>
